<compile_context>
chip_gen: v7x
topology: tpu7x:2x2x1
jax: 0.10.0
libtpu: 0.0.40
codegen_flags: <defaults>
</compile_context>

<pallas_src>
import jax
import jax.numpy as jnp
from jax import lax
from jax.experimental import pallas as pl
from jax.experimental.pallas import tpu as pltpu


# ---------------------------------------------------------------------------
# Fused kernel: hoisted GRU input projection + bi-GRU recurrence + PIENet
# (attention, fc residual, LayerNorm, L2 normalize) for one batch tile.
# ---------------------------------------------------------------------------
def pietext_kernel(maxlen_ref,                       # scalar-prefetch (SMEM)
                   x_ref, len_ref,
                   wih_ref, bih_ref,
                   whh_f_ref, bhh_f_ref, whh_b_ref, bhh_b_ref,
                   w1t_ref, w2_ref, fcwt_ref, fcb_ref, gamma_ref, beta_ref,
                   out_ref, attn_ref, res_ref,
                   gi_scr, hf_scr, hb_scr):
    T, Bt, D = x_ref.shape                 # time-major wemb tile (bf16)
    H = whh_f_ref.shape[0]                 # GRU hidden per direction (E = 2H)
    lengths = len_ref[...]                 # [Bt, 1] int32

    # x2d: [T*Bt, D] bf16 MXU operand (Bt % 8 == 0 -> layout-preserving reshape)
    x2d = x_ref[...].reshape(T * Bt, D)

    # --- hoisted GRU input projection, both directions, input bias folded ---
    # gi_scr[t, b, :] = x[t, b, :] @ wih_cat + bih_cat; cols [fwd r z n | bwd r z n].
    # Stored bf16 (half the VMEM, half the per-step vld inside the recurrence).
    gi_scr[...] = (jnp.dot(x2d, wih_ref[...],
                           preferred_element_type=jnp.float32)
                   + bih_ref[...]).reshape(T, Bt, 6 * H).astype(jnp.bfloat16)

    # --- attention branch (independent of the recurrence) -------------------
    h1 = jnp.tanh(jnp.dot(x2d, w1t_ref[...],
                          preferred_element_type=jnp.float32))      # [T*Bt, d_h]
    d_h = h1.shape[-1]
    scores_tb = jnp.sum(h1.reshape(T, Bt, d_h)
                        * w2_ref[...].reshape(1, 1, d_h), axis=-1)   # [T, Bt]
    scores = scores_tb.T                                             # [Bt, T]

    t_idx = lax.broadcasted_iota(jnp.int32, (Bt, T), 1)
    scores = jnp.where(t_idx >= lengths, -1e30, scores)  # finite sentinel: no
    m = jnp.max(scores, axis=-1, keepdims=True)          # NaN for length-0 rows
    e = jnp.exp(scores - m)
    attn = e / jnp.sum(e, axis=-1, keepdims=True)         # softmax over T
    attn_ref[...] = attn                                   # [Bt, T] lane-dense

    # attention pooling: pooled[b, d] = sum_t attn[b, t] * x[t, b, d]
    # Chunked over T (chunks read straight from the ref) so the broadcast
    # temporary stays small; accumulate in f32.
    attn_tb = attn.T                                       # [T, Bt] f32
    pooled = jnp.zeros((Bt, D), jnp.float32)
    CH = 8
    for t0 in range(0, T, CH):
        ch = min(CH, T - t0)
        xc = x_ref[t0:t0 + ch].astype(jnp.float32)         # [ch, Bt, D]
        wc = attn_tb[t0:t0 + ch][:, :, None]               # [ch, Bt, 1]
        pooled = pooled + jnp.sum(wc * xc, axis=0)

    # --- merged fwd/bwd GRU recurrence (only h @ whh inside the loop) --------
    whh_f = whh_f_ref[...]; bhh_f = bhh_f_ref[...]          # whh: bf16
    whh_b = whh_b_ref[...]; bhh_b = bhh_b_ref[...]

    def cell(gi, h, whh, bhh):
        # h is carried f32; cast to bf16 only for the serial-chain MXU dot.
        gh = jnp.dot(h.astype(jnp.bfloat16), whh,
                     preferred_element_type=jnp.float32) + bhh
        r = jax.nn.sigmoid(gi[:, 0:H] + gh[:, 0:H])
        z = jax.nn.sigmoid(gi[:, H:2 * H] + gh[:, H:2 * H])
        n = jnp.tanh(gi[:, 2 * H:3 * H] + r * gh[:, 2 * H:3 * H])
        return (1.0 - z) * n + z * h

    hf_scr[...] = jnp.zeros_like(hf_scr)
    hb_scr[...] = jnp.zeros_like(hb_scr)

    # Trip count bounded by this tile's max sequence length (scalar prefetch).
    max_len = maxlen_ref[pl.program_id(0)]

    @pl.loop(0, max_len)
    def _(i):
        tb = max_len - 1 - i
        gi_f = gi_scr[i, :, 0:3 * H].astype(jnp.float32)        # [Bt, 3H]
        gi_b = gi_scr[tb, :, 3 * H:6 * H].astype(jnp.float32)   # [Bt, 3H]
        h_f = hf_scr[...]
        h_b = hb_scr[...]
        # pack_padded_sequence semantics: only update while t < length.
        hf_scr[...] = jnp.where(i < lengths, cell(gi_f, h_f, whh_f, bhh_f), h_f)
        hb_scr[...] = jnp.where(tb < lengths, cell(gi_b, h_b, whh_b, bhh_b), h_b)

    rnn = jnp.concatenate([hf_scr[...], hb_scr[...]], axis=-1)   # [Bt, E]

    # --- PIE residual + LayerNorm + L2 normalize -----------------------------
    residual = jax.nn.sigmoid(
        jnp.dot(pooled.astype(jnp.bfloat16), fcwt_ref[...],
                preferred_element_type=jnp.float32) + fcb_ref[...])  # [Bt, E]

    y = rnn + residual
    mean = jnp.mean(y, axis=-1, keepdims=True)
    var = jnp.mean(jnp.square(y - mean), axis=-1, keepdims=True)
    y = (y - mean) * lax.rsqrt(var + 1e-5) * gamma_ref[...] + beta_ref[...]

    # F.normalize(p=2, dim=-1), eps = 1e-12 (max(||x||, eps) == sqrt(max(s, eps^2)))
    out_ref[...] = y * lax.rsqrt(
        jnp.maximum(jnp.sum(y * y, axis=-1, keepdims=True), 1e-24))
    res_ref[...] = residual * lax.rsqrt(
        jnp.maximum(jnp.sum(residual * residual, axis=-1, keepdims=True), 1e-24))


# ---------------------------------------------------------------------------
# Wrapper
# ---------------------------------------------------------------------------
def _round_up(x, m):
    return (x + m - 1) // m * m


def _choose_batch_tile(B):
    """Generation-aware batch tiling.

    Single-TC parts (v5e/v6e, 128 MiB VMEM): biggest tile (up to 128 rows) to
    amortize the serial recurrence and per-grid-step overhead.  Other parts
    (v7x: 2 TCs, 64 MiB/TC): tiles <= 64 rows and >= 2 grid tiles when the
    batch allows, so both TensorCores get work under ("parallel",).
    """
    try:
        kind = jax.devices()[0].device_kind.lower()
    except Exception:
        kind = ""
    single_tc = ("v5" in kind) or ("v6" in kind)
    cap = 128 if single_tc else 64
    b8 = _round_up(B, 8)
    bt = min(cap, b8)
    if (not single_tc) and b8 >= 16 and b8 // bt < 2:
        bt = max(8, _round_up((b8 + 1) // 2, 8))
    b_pad = _round_up(b8, bt)
    return bt, b_pad


@jax.jit
def pietext_forward(token_ids, lengths, params):
    B, T = token_ids.shape
    D = params['embed'].shape[1]          # lane-padded word_dim
    E = params['ln_gamma'].shape[-1]
    H = E // 2
    d_h = params['w2'].shape[-1]          # lane-padded attention hidden

    B_tile, B_pad = _choose_batch_tile(B)
    n_tiles = B_pad // B_tile

    tok = jnp.pad(token_ids, ((0, B_pad - B), (0, 0)))
    lens = jnp.pad(lengths.astype(jnp.int32), (0, B_pad - B))   # padded rows: len 0

    # Embedding gather (plain-JAX glue), time-major [T, B, D], emitted bf16
    # (largest per-tile DMA / HBM intermediate halved; MXU consumes bf16).
    x_tbd = jnp.take(params['embed'], tok.T, axis=0).astype(jnp.bfloat16)
    len_b1 = lens.reshape(B_pad, 1)
    # Per-tile max length -> scalar prefetch (bounds the recurrence trip count).
    tile_max = jnp.max(lens.reshape(n_tiles, B_tile), axis=1).astype(jnp.int32)

    # VMEM limit derived from the actual per-tile footprint (weights are
    # double-buffered by default; +50% slack for in-kernel temporaries).
    MiB = 1 << 20
    weight_keys = ('wih_cat', 'bih_cat', 'whh_f_t', 'bhh_f', 'whh_b_t', 'bhh_b',
                   'w1_t', 'w2', 'fc_w_t', 'fc_b', 'ln_gamma', 'ln_beta')
    weight_bytes = sum(params[k].size * params[k].dtype.itemsize for k in weight_keys)
    tile_io_bytes = T * B_tile * D * 2 + B_tile * 4 + B_tile * (2 * E + T) * 4
    scratch_bytes = T * B_tile * 6 * H * 2 + 2 * B_tile * H * 4
    temp_bytes = T * B_tile * d_h * 4 + 3 * B_tile * T * 4 + 4 * B_tile * D * 4
    need = 2 * (weight_bytes + tile_io_bytes) + scratch_bytes + temp_bytes
    vmem_limit = int(min(max(int(need * 1.5), 32 * MiB), 96 * MiB))

    def _full(shape):  # whole-array block (weights), constant across the grid
        return pl.BlockSpec(shape, lambda i, mx, _s=shape: (0,) * len(_s))

    out_p, attn_p, res_p = pl.pallas_call(
        pietext_kernel,
        out_shape=(jax.ShapeDtypeStruct((B_pad, E), jnp.float32),
                   jax.ShapeDtypeStruct((B_pad, T), jnp.float32),
                   jax.ShapeDtypeStruct((B_pad, E), jnp.float32)),
        grid_spec=pltpu.PrefetchScalarGridSpec(
            num_scalar_prefetch=1,                 # tile_max -> SMEM
            grid=(n_tiles,),
            in_specs=[
                pl.BlockSpec((T, B_tile, D), lambda i, mx: (0, i, 0)),  # wemb tile
                pl.BlockSpec((B_tile, 1), lambda i, mx: (i, 0)),        # lengths
                _full((D, 6 * H)), _full((1, 6 * H)),                   # wih_cat, bih_cat
                _full((H, 3 * H)), _full((1, 3 * H)),                   # whh_f, bhh_f
                _full((H, 3 * H)), _full((1, 3 * H)),                   # whh_b, bhh_b
                _full((D, d_h)), _full((1, d_h)),                       # w1_t, w2
                _full((D, E)), _full((1, E)),                           # fc_w_t, fc_b
                _full((1, E)), _full((1, E)),                           # gamma, beta
            ],
            out_specs=(pl.BlockSpec((B_tile, E), lambda i, mx: (i, 0)),
                       pl.BlockSpec((B_tile, T), lambda i, mx: (i, 0)),
                       pl.BlockSpec((B_tile, E), lambda i, mx: (i, 0))),
            scratch_shapes=[pltpu.VMEM((T, B_tile, 6 * H), jnp.bfloat16),  # gi (bf16)
                            pltpu.VMEM((B_tile, H), jnp.float32),          # h_fwd
                            pltpu.VMEM((B_tile, H), jnp.float32)],         # h_bwd
        ),
        compiler_params=pltpu.CompilerParams(
            dimension_semantics=("parallel",),
            vmem_limit_bytes=vmem_limit,
        ),
    )(tile_max, x_tbd, len_b1,
      params['wih_cat'], params['bih_cat'],
      params['whh_f_t'], params['bhh_f'], params['whh_b_t'], params['bhh_b'],
      params['w1_t'], params['w2'], params['fc_w_t'], params['fc_b'],
      params['ln_gamma'], params['ln_beta'])

    # num_embeds == 1 -> 'b t -> b 1 t'; attn back to module shape [B, T, 1]
    out = out_p[:B, None, :]
    attn = attn_p[:B, :, None]
    residual = res_p[:B, None, :]
    return out, attn, residual


# ---------------------------------------------------------------------------
# Deterministic synthetic parameter init (shapes from the module __init__).
# word_dim (D) and attention hidden (d_h) are zero-padded up to multiples of
# 128 so MXU K/N and lane slices are aligned; zero pads are mathematically
# inert (zero embedding columns x zero weight rows, tanh(0)*0 contributions).
# TODO(synk): real PIEText loads GloVe vectors + an nltk vocab; here weights
#             are deterministic synthetic values from PRNGKey(0).
# ---------------------------------------------------------------------------
def _xavier_uniform(key, shape):
    fan_out, fan_in = shape
    bound = (6.0 / (fan_in + fan_out)) ** 0.5
    return jax.random.uniform(key, shape, jnp.float32, -bound, bound)


def _pad_axis(a, axis, mult):
    pad = (-a.shape[axis]) % mult
    if pad == 0:
        return a
    widths = [(0, 0)] * a.ndim
    widths[axis] = (0, pad)
    return jnp.pad(a, widths)


def init_params(key, vocab_size, word_dim, embed_size):
    H = embed_size // 2          # GRU hidden per direction
    d_h = word_dim // 2          # attention hidden
    ks = jax.random.split(key, 12)
    bound = 1.0 / (H ** 0.5)
    u = lambda kk, shape: jax.random.uniform(kk, shape, jnp.float32, -bound, bound)

    # PyTorch GRU layout: weight_ih [3H, D], weight_hh [3H, H], gates (r, z, n).
    wih_f = u(ks[1], (3 * H, word_dim)); whh_f = u(ks[2], (3 * H, H))
    wih_b = u(ks[3], (3 * H, word_dim)); whh_b = u(ks[4], (3 * H, H))
    bih_f = u(ks[5], (3 * H,)); bhh_f = u(ks[6], (3 * H,))
    bih_b = u(ks[7], (3 * H,)); bhh_b = u(ks[8], (3 * H,))

    embed = jax.random.normal(ks[0], (vocab_size, word_dim), jnp.float32)
    wih_cat = jnp.concatenate([wih_f.T, wih_b.T], axis=1)          # [D, 6H]
    w1_t = _xavier_uniform(ks[9], (d_h, word_dim)).T               # [D, d_h]
    w2 = _xavier_uniform(ks[10], (1, d_h))                         # [1, d_h]
    fc_w_t = _xavier_uniform(ks[11], (embed_size, word_dim)).T     # [D, E]

    # Lane-alignment padding (D and d_h -> multiples of 128).
    embed = _pad_axis(embed, 1, 128)
    wih_cat = _pad_axis(wih_cat, 0, 128)
    w1_t = _pad_axis(_pad_axis(w1_t, 0, 128), 1, 128)
    w2 = _pad_axis(w2, 1, 128)
    fc_w_t = _pad_axis(fc_w_t, 0, 128)

    return {
        'embed':   embed,                                          # f32 table
        # hoisted input projection [D, 6H] = [fwd r z n | bwd r z n], bf16 MXU operand
        'wih_cat': wih_cat.astype(jnp.bfloat16),
        'bih_cat': jnp.concatenate([bih_f, bih_b]).reshape(1, 6 * H),
        # recurrent weights bf16 (serial-chain MXU dot); biases f32
        'whh_f_t': whh_f.T.astype(jnp.bfloat16), 'bhh_f': bhh_f.reshape(1, 3 * H),
        'whh_b_t': whh_b.T.astype(jnp.bfloat16), 'bhh_b': bhh_b.reshape(1, 3 * H),
        # MultiHeadSelfAttention (n_head = num_embeds = 1)
        'w1_t':    w1_t.astype(jnp.bfloat16),
        'w2':      w2,
        # PIENet fc
        'fc_w_t':  fc_w_t.astype(jnp.bfloat16),
        'fc_b':    jnp.zeros((1, embed_size), jnp.float32),
        # LayerNorm
        'ln_gamma': jnp.ones((1, embed_size), jnp.float32),
        'ln_beta':  jnp.zeros((1, embed_size), jnp.float32),
    }


if __name__ == "__main__":
    key = jax.random.PRNGKey(0)
    kp, kx = jax.random.split(key)

    B, T = 2, 8
    vocab_size, word_dim, embed_size = 50, 32, 32   # small, shape-consistent config

    params = init_params(kp, vocab_size, word_dim, embed_size)
    token_ids = jax.random.randint(kx, (B, T), 0, vocab_size, dtype=jnp.int32)
    lengths = jnp.array([8, 5], dtype=jnp.int32)    # padded positions exist for b=1

    out, attn, residual = pietext_forward(token_ids, lengths, params)
    jax.block_until_ready((out, attn, residual))

    assert out.shape == (B, 1, embed_size)
    assert attn.shape == (B, T, 1)
    assert residual.shape == (B, 1, embed_size)
    assert bool(jnp.all(jnp.isfinite(out)))
    assert bool(jnp.all(jnp.isfinite(attn)))
    assert bool(jnp.all(jnp.isfinite(residual)))
    print("KERNEL_OK")
</pallas_src>

<mosaic_0001>
module attributes {stable_mosaic.version = 11 : i64} {
  func.func @pietext_kernel(%arg0: i32, %arg1: memref<1xi32, #tpu.memory_space<smem>>, %arg2: memref<8x8x128xbf16, #tpu.memory_space<vmem>>, %arg3: memref<8x1xi32, #tpu.memory_space<vmem>>, %arg4: memref<128x96xbf16, #tpu.memory_space<vmem>>, %arg5: memref<1x96xf32, #tpu.memory_space<vmem>>, %arg6: memref<16x48xbf16, #tpu.memory_space<vmem>>, %arg7: memref<1x48xf32, #tpu.memory_space<vmem>>, %arg8: memref<16x48xbf16, #tpu.memory_space<vmem>>, %arg9: memref<1x48xf32, #tpu.memory_space<vmem>>, %arg10: memref<128x128xbf16, #tpu.memory_space<vmem>>, %arg11: memref<1x128xf32, #tpu.memory_space<vmem>>, %arg12: memref<128x32xbf16, #tpu.memory_space<vmem>>, %arg13: memref<1x32xf32, #tpu.memory_space<vmem>>, %arg14: memref<1x32xf32, #tpu.memory_space<vmem>>, %arg15: memref<1x32xf32, #tpu.memory_space<vmem>>, %arg16: memref<8x32xf32, #tpu.memory_space<vmem>>, %arg17: memref<8x8xf32, #tpu.memory_space<vmem>>, %arg18: memref<8x32xf32, #tpu.memory_space<vmem>>, %arg19: memref<8x8x96xbf16, #tpu.memory_space<vmem>>, %arg20: memref<8x16xf32, #tpu.memory_space<vmem>>, %arg21: memref<8x16xf32, #tpu.memory_space<vmem>>) attributes {dimension_semantics = [#tpu.dimension_semantics<parallel>], iteration_bounds = array<i64: 1>, scalar_prefetch = 1 : i64, scratch_operands = 3 : i64, tpu.core_type = #tpu.core_type<tc>, window_params = [{transform_indices = @transform_0, window_bounds = array<i64: 8, 8, 128>}, {transform_indices = @transform_1, window_bounds = array<i64: 8, 1>}, {pipeline_mode = #tpu.pipeline_mode<synchronous>, transform_indices = @transform_2, window_bounds = array<i64: 128, 96>}, {pipeline_mode = #tpu.pipeline_mode<synchronous>, transform_indices = @transform_3, window_bounds = array<i64: 1, 96>}, {pipeline_mode = #tpu.pipeline_mode<synchronous>, transform_indices = @transform_4, window_bounds = array<i64: 16, 48>}, {pipeline_mode = #tpu.pipeline_mode<synchronous>, transform_indices = @transform_5, window_bounds = array<i64: 1, 48>}, {pipeline_mode = #tpu.pipeline_mode<synchronous>, transform_indices = @transform_6, window_bounds = array<i64: 16, 48>}, {pipeline_mode = #tpu.pipeline_mode<synchronous>, transform_indices = @transform_7, window_bounds = array<i64: 1, 48>}, {pipeline_mode = #tpu.pipeline_mode<synchronous>, transform_indices = @transform_8, window_bounds = array<i64: 128, 128>}, {pipeline_mode = #tpu.pipeline_mode<synchronous>, transform_indices = @transform_9, window_bounds = array<i64: 1, 128>}, {pipeline_mode = #tpu.pipeline_mode<synchronous>, transform_indices = @transform_10, window_bounds = array<i64: 128, 32>}, {pipeline_mode = #tpu.pipeline_mode<synchronous>, transform_indices = @transform_11, window_bounds = array<i64: 1, 32>}, {pipeline_mode = #tpu.pipeline_mode<synchronous>, transform_indices = @transform_12, window_bounds = array<i64: 1, 32>}, {pipeline_mode = #tpu.pipeline_mode<synchronous>, transform_indices = @transform_13, window_bounds = array<i64: 1, 32>}, {transform_indices = @transform_14, window_bounds = array<i64: 8, 32>}, {transform_indices = @transform_15, window_bounds = array<i64: 8, 8>}, {transform_indices = @transform_16, window_bounds = array<i64: 8, 32>}]} {
    %c0 = arith.constant 0 : index
    %c0_0 = arith.constant 0 : index
    %0 = vector.load %arg3[%c0, %c0_0] : memref<8x1xi32, #tpu.memory_space<vmem>>, vector<8x1xi32>
    %c0_1 = arith.constant 0 : index
    %c0_2 = arith.constant 0 : index
    %c0_3 = arith.constant 0 : index
    %1 = vector.load %arg2[%c0_1, %c0_2, %c0_3] : memref<8x8x128xbf16, #tpu.memory_space<vmem>>, vector<8x8x128xbf16>
    %2 = vector.shape_cast %1 : vector<8x8x128xbf16> to vector<64x128xbf16>
    %c0_4 = arith.constant 0 : index
    %c0_5 = arith.constant 0 : index
    %3 = vector.load %arg4[%c0_4, %c0_5] : memref<128x96xbf16, #tpu.memory_space<vmem>>, vector<128x96xbf16>
    %cst = arith.constant dense<0.000000e+00> : vector<64x96xf32>
    %4 = tpu.matmul %2, %3, %cst {dimension_numbers = #tpu.dot_dimension_numbers<[1], [0], [0], [1], [0, 0, 1, 1], [], []>} : vector<64x128xbf16>, vector<128x96xbf16>, vector<64x96xf32> -> vector<64x96xf32>
    %c0_6 = arith.constant 0 : index
    %c0_7 = arith.constant 0 : index
    %5 = vector.load %arg5[%c0_6, %c0_7] : memref<1x96xf32, #tpu.memory_space<vmem>>, vector<1x96xf32>
    %6 = vector.broadcast %5 : vector<1x96xf32> to vector<64x96xf32>
    %7 = arith.addf %4, %6 : vector<64x96xf32>
    %8 = vector.shape_cast %7 : vector<64x96xf32> to vector<8x8x96xf32>
    %9 = arith.truncf %8 : vector<8x8x96xf32> to vector<8x8x96xbf16>
    %c0_8 = arith.constant 0 : index
    %c0_9 = arith.constant 0 : index
    %c0_10 = arith.constant 0 : index
    %10 = vector.load %arg19[%c0_8, %c0_9, %c0_10] : memref<8x8x96xbf16, #tpu.memory_space<vmem>>, vector<8x8x96xbf16>
    tpu.vector_store %arg19[%c0_8, %c0_9, %c0_10], %9 {strides = array<i32>} : memref<8x8x96xbf16, #tpu.memory_space<vmem>>, vector<8x8x96xbf16>,
    %c0_11 = arith.constant 0 : index
    %c0_12 = arith.constant 0 : index
    %11 = vector.load %arg10[%c0_11, %c0_12] : memref<128x128xbf16, #tpu.memory_space<vmem>>, vector<128x128xbf16>
    %cst_13 = arith.constant dense<0.000000e+00> : vector<64x128xf32>
    %12 = tpu.matmul %2, %11, %cst_13 {dimension_numbers = #tpu.dot_dimension_numbers<[1], [0], [0], [1], [0, 0, 1, 1], [], []>} : vector<64x128xbf16>, vector<128x128xbf16>, vector<64x128xf32> -> vector<64x128xf32>
    %13 = math.tanh %12 : vector<64x128xf32>
    %14 = vector.shape_cast %13 : vector<64x128xf32> to vector<8x8x128xf32>
    %c0_14 = arith.constant 0 : index
    %c0_15 = arith.constant 0 : index
    %15 = vector.load %arg11[%c0_14, %c0_15] : memref<1x128xf32, #tpu.memory_space<vmem>>, vector<1x128xf32>
    %16 = vector.shape_cast %15 : vector<1x128xf32> to vector<1x1x128xf32>
    %17 = vector.broadcast %16 : vector<1x1x128xf32> to vector<8x8x128xf32>
    %18 = arith.mulf %14, %17 : vector<8x8x128xf32>
    %cst_16 = arith.constant dense<0.000000e+00> : vector<8x8xf32>
    %19 = vector.multi_reduction <add>, %18, %cst_16 [2] : vector<8x8x128xf32> to vector<8x8xf32>
    %20 = tpu.transpose %19, [1, 0] : vector<8x8xf32> -> vector<8x8xf32>
    %21 = tpu.iota {dimensions = array<i32: 1>} : vector<8x8xi32>
    %22 = vector.broadcast %0 : vector<8x1xi32> to vector<8x8xi32>
    %23 = arith.cmpi sge, %21, %22 : vector<8x8xi32>
    %cst_17 = arith.constant -1.000000e+30 : f32
    %24 = vector.broadcast %cst_17 : f32 to vector<8x8xf32>
    %25 = arith.select %23, %24, %20 : vector<8x8xi1>, vector<8x8xf32>
    %cst_18 = arith.constant dense<0xFF800000> : vector<8xf32>
    %26 = vector.multi_reduction <maximumf>, %25, %cst_18 [1] : vector<8x8xf32> to vector<8xf32>
    %27 = vector.shape_cast %26 : vector<8xf32> to vector<8x1xf32>
    %28 = vector.broadcast %27 : vector<8x1xf32> to vector<8x8xf32>
    %29 = arith.subf %25, %28 : vector<8x8xf32>
    %30 = math.exp %29 : vector<8x8xf32>
    %cst_19 = arith.constant dense<0.000000e+00> : vector<8xf32>
    %31 = vector.multi_reduction <add>, %30, %cst_19 [1] : vector<8x8xf32> to vector<8xf32>
    %32 = vector.shape_cast %31 : vector<8xf32> to vector<8x1xf32>
    %33 = vector.broadcast %32 : vector<8x1xf32> to vector<8x8xf32>
    %34 = arith.divf %30, %33 : vector<8x8xf32>
    %c0_20 = arith.constant 0 : index
    %c0_21 = arith.constant 0 : index
    %35 = vector.load %arg17[%c0_20, %c0_21] : memref<8x8xf32, #tpu.memory_space<vmem>>, vector<8x8xf32>
    tpu.vector_store %arg17[%c0_20, %c0_21], %34 {strides = array<i32>} : memref<8x8xf32, #tpu.memory_space<vmem>>, vector<8x8xf32>,
    %36 = tpu.transpose %34, [1, 0] : vector<8x8xf32> -> vector<8x8xf32>
    %cst_22 = arith.constant 0.000000e+00 : f32
    %37 = vector.broadcast %cst_22 : f32 to vector<8x128xf32>
    %c0_23 = arith.constant 0 : index
    %c0_24 = arith.constant 0 : index
    %c0_25 = arith.constant 0 : index
    %38 = vector.load %arg2[%c0_23, %c0_24, %c0_25] : memref<8x8x128xbf16, #tpu.memory_space<vmem>>, vector<8x8x128xbf16>
    %39 = arith.extf %38 : vector<8x8x128xbf16> to vector<8x8x128xf32>
    %40 = vector.shape_cast %36 : vector<8x8xf32> to vector<8x8x1xf32>
    %41 = vector.broadcast %40 : vector<8x8x1xf32> to vector<8x8x128xf32>
    %42 = arith.mulf %41, %39 : vector<8x8x128xf32>
    %cst_26 = arith.constant dense<0.000000e+00> : vector<8x128xf32>
    %43 = vector.multi_reduction <add>, %42, %cst_26 [0] : vector<8x8x128xf32> to vector<8x128xf32>
    %44 = arith.addf %37, %43 : vector<8x128xf32>
    %c0_27 = arith.constant 0 : index
    %c0_28 = arith.constant 0 : index
    %45 = vector.load %arg6[%c0_27, %c0_28] : memref<16x48xbf16, #tpu.memory_space<vmem>>, vector<16x48xbf16>
    %c0_29 = arith.constant 0 : index
    %c0_30 = arith.constant 0 : index
    %46 = vector.load %arg7[%c0_29, %c0_30] : memref<1x48xf32, #tpu.memory_space<vmem>>, vector<1x48xf32>
    %c0_31 = arith.constant 0 : index
    %c0_32 = arith.constant 0 : index
    %47 = vector.load %arg8[%c0_31, %c0_32] : memref<16x48xbf16, #tpu.memory_space<vmem>>, vector<16x48xbf16>
    %c0_33 = arith.constant 0 : index
    %c0_34 = arith.constant 0 : index
    %48 = vector.load %arg9[%c0_33, %c0_34] : memref<1x48xf32, #tpu.memory_space<vmem>>, vector<1x48xf32>
    %cst_35 = arith.constant 0.000000e+00 : f32
    %49 = vector.broadcast %cst_35 : f32 to vector<8x16xf32>
    %c0_36 = arith.constant 0 : index
    %c0_37 = arith.constant 0 : index
    %50 = vector.load %arg20[%c0_36, %c0_37] : memref<8x16xf32, #tpu.memory_space<vmem>>, vector<8x16xf32>
    tpu.vector_store %arg20[%c0_36, %c0_37], %49 {strides = array<i32>} : memref<8x16xf32, #tpu.memory_space<vmem>>, vector<8x16xf32>,
    %cst_38 = arith.constant 0.000000e+00 : f32
    %51 = vector.broadcast %cst_38 : f32 to vector<8x16xf32>
    %c0_39 = arith.constant 0 : index
    %c0_40 = arith.constant 0 : index
    %52 = vector.load %arg21[%c0_39, %c0_40] : memref<8x16xf32, #tpu.memory_space<vmem>>, vector<8x16xf32>
    tpu.vector_store %arg21[%c0_39, %c0_40], %51 {strides = array<i32>} : memref<8x16xf32, #tpu.memory_space<vmem>>, vector<8x16xf32>,
    %53 = arith.index_cast %arg0 : i32 to index
    %54 = memref.load %arg1[%53] : memref<1xi32, #tpu.memory_space<smem>>
    %c0_i32 = arith.constant 0 : i32
    %55 = arith.subi %54, %c0_i32 : i32
    %c1_i32 = arith.constant 1 : i32
    %c1_i32_41 = arith.constant 1 : i32
    %56 = arith.subi %c1_i32, %c1_i32_41 : i32
    %57 = arith.addi %55, %56 : i32
    %c1_i32_42 = arith.constant 1 : i32
    %58 = arith.divsi %57, %c1_i32_42 : i32
    %c1_i32_43 = arith.constant 1 : i32
    %c0_i32_44 = arith.constant 0 : i32
    %c0_i32_45 = arith.constant 0 : i32
    %59 = arith.subi %58, %c0_i32_45 : i32
    %60 = arith.addi %c0_i32_45, %59 : i32
    %c1_i32_46 = arith.constant 1 : i32
    scf.for %arg22 = %c0_i32_45 to %60 step %c1_i32_46  : i32 {
      %118 = arith.muli %arg22, %c1_i32_43 : i32
      %119 = arith.addi %c0_i32_44, %118 : i32
      %c1_i32_74 = arith.constant 1 : i32
      %120 = arith.subi %54, %c1_i32_74 : i32
      %121 = arith.subi %120, %119 : i32
      %122 = arith.index_cast %119 : i32 to index
      %c0_75 = arith.constant 0 : index
      %c0_76 = arith.constant 0 : index
      %123 = vector.load %arg19[%122, %c0_75, %c0_76] : memref<8x8x96xbf16, #tpu.memory_space<vmem>>, vector<1x8x48xbf16>
      %124 = vector.shape_cast %123 : vector<1x8x48xbf16> to vector<8x48xbf16>
      %125 = arith.extf %124 : vector<8x48xbf16> to vector<8x48xf32>
      %126 = arith.index_cast %121 : i32 to index
      %c0_77 = arith.constant 0 : index
      %c48 = arith.constant 48 : index
      %127 = vector.load %arg19[%126, %c0_77, %c48] : memref<8x8x96xbf16, #tpu.memory_space<vmem>>, vector<1x8x48xbf16>
      %128 = vector.shape_cast %127 : vector<1x8x48xbf16> to vector<8x48xbf16>
      %129 = arith.extf %128 : vector<8x48xbf16> to vector<8x48xf32>
      %c0_78 = arith.constant 0 : index
      %c0_79 = arith.constant 0 : index
      %130 = vector.load %arg20[%c0_78, %c0_79] : memref<8x16xf32, #tpu.memory_space<vmem>>, vector<8x16xf32>
      %c0_80 = arith.constant 0 : index
      %c0_81 = arith.constant 0 : index
      %131 = vector.load %arg21[%c0_80, %c0_81] : memref<8x16xf32, #tpu.memory_space<vmem>>, vector<8x16xf32>
      %132 = vector.broadcast %119 : i32 to vector<8x1xi32>
      %133 = arith.cmpi slt, %132, %0 : vector<8x1xi32>
      %134 = arith.truncf %130 : vector<8x16xf32> to vector<8x16xbf16>
      %cst_82 = arith.constant dense<0.000000e+00> : vector<8x48xf32>
      %135 = tpu.matmul %134, %45, %cst_82 {dimension_numbers = #tpu.dot_dimension_numbers<[1], [0], [0], [1], [0, 0, 1, 1], [], []>} : vector<8x16xbf16>, vector<16x48xbf16>, vector<8x48xf32> -> vector<8x48xf32>
      %136 = vector.broadcast %46 : vector<1x48xf32> to vector<8x48xf32>
      %137 = arith.addf %135, %136 : vector<8x48xf32>
      %138 = vector.extract_strided_slice %125 {offsets = [0, 0], sizes = [8, 16], strides = [1, 1]} : vector<8x48xf32> to vector<8x16xf32>
      %139 = vector.extract_strided_slice %137 {offsets = [0, 0], sizes = [8, 16], strides = [1, 1]} : vector<8x48xf32> to vector<8x16xf32>
      %140 = arith.addf %138, %139 : vector<8x16xf32>
      %141 = arith.negf %140 : vector<8x16xf32>
      %142 = math.exp %141 : vector<8x16xf32>
      %cst_83 = arith.constant 1.000000e+00 : f32
      %143 = vector.broadcast %cst_83 : f32 to vector<8x16xf32>
      %144 = arith.addf %143, %142 : vector<8x16xf32>
      %145 = arith.divf %143, %144 : vector<8x16xf32>
      %146 = vector.extract_strided_slice %125 {offsets = [0, 16], sizes = [8, 16], strides = [1, 1]} : vector<8x48xf32> to vector<8x16xf32>
      %147 = vector.extract_strided_slice %137 {offsets = [0, 16], sizes = [8, 16], strides = [1, 1]} : vector<8x48xf32> to vector<8x16xf32>
      %148 = arith.addf %146, %147 : vector<8x16xf32>
      %149 = arith.negf %148 : vector<8x16xf32>
      %150 = math.exp %149 : vector<8x16xf32>
      %cst_84 = arith.constant 1.000000e+00 : f32
      %151 = vector.broadcast %cst_84 : f32 to vector<8x16xf32>
      %152 = arith.addf %151, %150 : vector<8x16xf32>
      %153 = arith.divf %151, %152 : vector<8x16xf32>
      %154 = vector.extract_strided_slice %125 {offsets = [0, 32], sizes = [8, 16], strides = [1, 1]} : vector<8x48xf32> to vector<8x16xf32>
      %155 = vector.extract_strided_slice %137 {offsets = [0, 32], sizes = [8, 16], strides = [1, 1]} : vector<8x48xf32> to vector<8x16xf32>
      %156 = arith.mulf %145, %155 : vector<8x16xf32>
      %157 = arith.addf %154, %156 : vector<8x16xf32>
      %158 = math.tanh %157 : vector<8x16xf32>
      %cst_85 = arith.constant 1.000000e+00 : f32
      %159 = vector.broadcast %cst_85 : f32 to vector<8x16xf32>
      %160 = arith.subf %159, %153 : vector<8x16xf32>
      %161 = arith.mulf %160, %158 : vector<8x16xf32>
      %162 = arith.mulf %153, %130 : vector<8x16xf32>
      %163 = arith.addf %161, %162 : vector<8x16xf32>
      %164 = vector.shape_cast %133 : vector<8x1xi1> to vector<8x1xi1>
      %165 = vector.broadcast %164 : vector<8x1xi1> to vector<8x16xi1>
      %166 = arith.select %165, %163, %130 : vector<8x16xi1>, vector<8x16xf32>
      %c0_86 = arith.constant 0 : index
      %c0_87 = arith.constant 0 : index
      %167 = vector.load %arg20[%c0_86, %c0_87] : memref<8x16xf32, #tpu.memory_space<vmem>>, vector<8x16xf32>
      tpu.vector_store %arg20[%c0_86, %c0_87], %166 {strides = array<i32>} : memref<8x16xf32, #tpu.memory_space<vmem>>, vector<8x16xf32>,
      %168 = vector.broadcast %121 : i32 to vector<8x1xi32>
      %169 = arith.cmpi slt, %168, %0 : vector<8x1xi32>
      %170 = arith.truncf %131 : vector<8x16xf32> to vector<8x16xbf16>
      %cst_88 = arith.constant dense<0.000000e+00> : vector<8x48xf32>
      %171 = tpu.matmul %170, %47, %cst_88 {dimension_numbers = #tpu.dot_dimension_numbers<[1], [0], [0], [1], [0, 0, 1, 1], [], []>} : vector<8x16xbf16>, vector<16x48xbf16>, vector<8x48xf32> -> vector<8x48xf32>
      %172 = vector.broadcast %48 : vector<1x48xf32> to vector<8x48xf32>
      %173 = arith.addf %171, %172 : vector<8x48xf32>
      %174 = vector.extract_strided_slice %129 {offsets = [0, 0], sizes = [8, 16], strides = [1, 1]} : vector<8x48xf32> to vector<8x16xf32>
      %175 = vector.extract_strided_slice %173 {offsets = [0, 0], sizes = [8, 16], strides = [1, 1]} : vector<8x48xf32> to vector<8x16xf32>
      %176 = arith.addf %174, %175 : vector<8x16xf32>
      %177 = arith.negf %176 : vector<8x16xf32>
      %178 = math.exp %177 : vector<8x16xf32>
      %cst_89 = arith.constant 1.000000e+00 : f32
      %179 = vector.broadcast %cst_89 : f32 to vector<8x16xf32>
      %180 = arith.addf %179, %178 : vector<8x16xf32>
      %181 = arith.divf %179, %180 : vector<8x16xf32>
      %182 = vector.extract_strided_slice %129 {offsets = [0, 16], sizes = [8, 16], strides = [1, 1]} : vector<8x48xf32> to vector<8x16xf32>
      %183 = vector.extract_strided_slice %173 {offsets = [0, 16], sizes = [8, 16], strides = [1, 1]} : vector<8x48xf32> to vector<8x16xf32>
      %184 = arith.addf %182, %183 : vector<8x16xf32>
      %185 = arith.negf %184 : vector<8x16xf32>
      %186 = math.exp %185 : vector<8x16xf32>
      %cst_90 = arith.constant 1.000000e+00 : f32
      %187 = vector.broadcast %cst_90 : f32 to vector<8x16xf32>
      %188 = arith.addf %187, %186 : vector<8x16xf32>
      %189 = arith.divf %187, %188 : vector<8x16xf32>
      %190 = vector.extract_strided_slice %129 {offsets = [0, 32], sizes = [8, 16], strides = [1, 1]} : vector<8x48xf32> to vector<8x16xf32>
      %191 = vector.extract_strided_slice %173 {offsets = [0, 32], sizes = [8, 16], strides = [1, 1]} : vector<8x48xf32> to vector<8x16xf32>
      %192 = arith.mulf %181, %191 : vector<8x16xf32>
      %193 = arith.addf %190, %192 : vector<8x16xf32>
      %194 = math.tanh %193 : vector<8x16xf32>
      %cst_91 = arith.constant 1.000000e+00 : f32
      %195 = vector.broadcast %cst_91 : f32 to vector<8x16xf32>
      %196 = arith.subf %195, %189 : vector<8x16xf32>
      %197 = arith.mulf %196, %194 : vector<8x16xf32>
      %198 = arith.mulf %189, %131 : vector<8x16xf32>
      %199 = arith.addf %197, %198 : vector<8x16xf32>
      %200 = vector.shape_cast %169 : vector<8x1xi1> to vector<8x1xi1>
      %201 = vector.broadcast %200 : vector<8x1xi1> to vector<8x16xi1>
      %202 = arith.select %201, %199, %131 : vector<8x16xi1>, vector<8x16xf32>
      %c0_92 = arith.constant 0 : index
      %c0_93 = arith.constant 0 : index
      %203 = vector.load %arg21[%c0_92, %c0_93] : memref<8x16xf32, #tpu.memory_space<vmem>>, vector<8x16xf32>
      tpu.vector_store %arg21[%c0_92, %c0_93], %202 {strides = array<i32>} : memref<8x16xf32, #tpu.memory_space<vmem>>, vector<8x16xf32>,
    }
    %c0_47 = arith.constant 0 : index
    %c0_48 = arith.constant 0 : index
    %61 = vector.load %arg20[%c0_47, %c0_48] : memref<8x16xf32, #tpu.memory_space<vmem>>, vector<8x16xf32>
    %c0_49 = arith.constant 0 : index
    %c0_50 = arith.constant 0 : index
    %62 = vector.load %arg21[%c0_49, %c0_50] : memref<8x16xf32, #tpu.memory_space<vmem>>, vector<8x16xf32>
    %63 = tpu.concatenate %61, %62 in 1 : vector<8x16xf32>, vector<8x16xf32> -> vector<8x32xf32>
    %64 = arith.truncf %44 : vector<8x128xf32> to vector<8x128xbf16>
    %c0_51 = arith.constant 0 : index
    %c0_52 = arith.constant 0 : index
    %65 = vector.load %arg12[%c0_51, %c0_52] : memref<128x32xbf16, #tpu.memory_space<vmem>>, vector<128x32xbf16>
    %cst_53 = arith.constant dense<0.000000e+00> : vector<8x32xf32>
    %66 = tpu.matmul %64, %65, %cst_53 {dimension_numbers = #tpu.dot_dimension_numbers<[1], [0], [0], [1], [0, 0, 1, 1], [], []>} : vector<8x128xbf16>, vector<128x32xbf16>, vector<8x32xf32> -> vector<8x32xf32>
    %c0_54 = arith.constant 0 : index
    %c0_55 = arith.constant 0 : index
    %67 = vector.load %arg13[%c0_54, %c0_55] : memref<1x32xf32, #tpu.memory_space<vmem>>, vector<1x32xf32>
    %68 = vector.broadcast %67 : vector<1x32xf32> to vector<8x32xf32>
    %69 = arith.addf %66, %68 : vector<8x32xf32>
    %70 = arith.negf %69 : vector<8x32xf32>
    %71 = math.exp %70 : vector<8x32xf32>
    %cst_56 = arith.constant 1.000000e+00 : f32
    %72 = vector.broadcast %cst_56 : f32 to vector<8x32xf32>
    %73 = arith.addf %72, %71 : vector<8x32xf32>
    %74 = arith.divf %72, %73 : vector<8x32xf32>
    %75 = arith.addf %63, %74 : vector<8x32xf32>
    %cst_57 = arith.constant dense<0.000000e+00> : vector<8xf32>
    %76 = vector.multi_reduction <add>, %75, %cst_57 [1] : vector<8x32xf32> to vector<8xf32>
    %77 = vector.shape_cast %76 : vector<8xf32> to vector<8x1xf32>
    %cst_58 = arith.constant 3.200000e+01 : f32
    %78 = vector.broadcast %cst_58 : f32 to vector<8x1xf32>
    %79 = arith.divf %77, %78 : vector<8x1xf32>
    %80 = vector.broadcast %79 : vector<8x1xf32> to vector<8x32xf32>
    %81 = arith.subf %75, %80 : vector<8x32xf32>
    %82 = arith.mulf %81, %81 : vector<8x32xf32>
    %cst_59 = arith.constant dense<0.000000e+00> : vector<8xf32>
    %83 = vector.multi_reduction <add>, %82, %cst_59 [1] : vector<8x32xf32> to vector<8xf32>
    %84 = vector.shape_cast %83 : vector<8xf32> to vector<8x1xf32>
    %cst_60 = arith.constant 3.200000e+01 : f32
    %85 = vector.broadcast %cst_60 : f32 to vector<8x1xf32>
    %86 = arith.divf %84, %85 : vector<8x1xf32>
    %87 = vector.broadcast %79 : vector<8x1xf32> to vector<8x32xf32>
    %88 = arith.subf %75, %87 : vector<8x32xf32>
    %cst_61 = arith.constant 9.99999974E-6 : f32
    %89 = vector.broadcast %cst_61 : f32 to vector<8x1xf32>
    %90 = arith.addf %86, %89 : vector<8x1xf32>
    %91 = math.rsqrt %90 : vector<8x1xf32>
    %92 = vector.broadcast %91 : vector<8x1xf32> to vector<8x32xf32>
    %93 = arith.mulf %88, %92 : vector<8x32xf32>
    %c0_62 = arith.constant 0 : index
    %c0_63 = arith.constant 0 : index
    %94 = vector.load %arg14[%c0_62, %c0_63] : memref<1x32xf32, #tpu.memory_space<vmem>>, vector<1x32xf32>
    %95 = vector.broadcast %94 : vector<1x32xf32> to vector<8x32xf32>
    %96 = arith.mulf %93, %95 : vector<8x32xf32>
    %c0_64 = arith.constant 0 : index
    %c0_65 = arith.constant 0 : index
    %97 = vector.load %arg15[%c0_64, %c0_65] : memref<1x32xf32, #tpu.memory_space<vmem>>, vector<1x32xf32>
    %98 = vector.broadcast %97 : vector<1x32xf32> to vector<8x32xf32>
    %99 = arith.addf %96, %98 : vector<8x32xf32>
    %100 = arith.mulf %99, %99 : vector<8x32xf32>
    %cst_66 = arith.constant dense<0.000000e+00> : vector<8xf32>
    %101 = vector.multi_reduction <add>, %100, %cst_66 [1] : vector<8x32xf32> to vector<8xf32>
    %102 = vector.shape_cast %101 : vector<8xf32> to vector<8x1xf32>
    %cst_67 = arith.constant 1.000000e-24 : f32
    %103 = vector.broadcast %cst_67 : f32 to vector<8x1xf32>
    %104 = arith.maximumf %102, %103 : vector<8x1xf32>
    %105 = math.rsqrt %104 : vector<8x1xf32>
    %106 = vector.broadcast %105 : vector<8x1xf32> to vector<8x32xf32>
    %107 = arith.mulf %99, %106 : vector<8x32xf32>
    %c0_68 = arith.constant 0 : index
    %c0_69 = arith.constant 0 : index
    %108 = vector.load %arg16[%c0_68, %c0_69] : memref<8x32xf32, #tpu.memory_space<vmem>>, vector<8x32xf32>
    tpu.vector_store %arg16[%c0_68, %c0_69], %107 {strides = array<i32>} : memref<8x32xf32, #tpu.memory_space<vmem>>, vector<8x32xf32>,
    %109 = arith.mulf %74, %74 : vector<8x32xf32>
    %cst_70 = arith.constant dense<0.000000e+00> : vector<8xf32>
    %110 = vector.multi_reduction <add>, %109, %cst_70 [1] : vector<8x32xf32> to vector<8xf32>
    %111 = vector.shape_cast %110 : vector<8xf32> to vector<8x1xf32>
    %cst_71 = arith.constant 1.000000e-24 : f32
    %112 = vector.broadcast %cst_71 : f32 to vector<8x1xf32>
    %113 = arith.maximumf %111, %112 : vector<8x1xf32>
    %114 = math.rsqrt %113 : vector<8x1xf32>
    %115 = vector.broadcast %114 : vector<8x1xf32> to vector<8x32xf32>
    %116 = arith.mulf %74, %115 : vector<8x32xf32>
    %c0_72 = arith.constant 0 : index
    %c0_73 = arith.constant 0 : index
    %117 = vector.load %arg18[%c0_72, %c0_73] : memref<8x32xf32, #tpu.memory_space<vmem>>, vector<8x32xf32>
    tpu.vector_store %arg18[%c0_72, %c0_73], %116 {strides = array<i32>} : memref<8x32xf32, #tpu.memory_space<vmem>>, vector<8x32xf32>,
    return
  }
  func.func @transform_0(%arg0: i32, %arg1: memref<1xi32, #tpu.memory_space<smem>>) -> (i32, i32, i32) {
    %c0_i32 = arith.constant 0 : i32
    %c0_i32_0 = arith.constant 0 : i32
    %c0_i32_1 = arith.constant 0 : i32
    return %c0_i32, %arg0, %c0_i32_0 : i32, i32, i32
  }
  func.func @transform_1(%arg0: i32, %arg1: memref<1xi32, #tpu.memory_space<smem>>) -> (i32, i32) {
    %c0_i32 = arith.constant 0 : i32
    %c0_i32_0 = arith.constant 0 : i32
    return %arg0, %c0_i32 : i32, i32
  }
  func.func @transform_2(%arg0: i32, %arg1: memref<1xi32, #tpu.memory_space<smem>>) -> (i32, i32) {
    %c0_i32 = arith.constant 0 : i32
    %c0_i32_0 = arith.constant 0 : i32
    %c0_i32_1 = arith.constant 0 : i32
    return %c0_i32, %c0_i32_0 : i32, i32
  }
  func.func @transform_3(%arg0: i32, %arg1: memref<1xi32, #tpu.memory_space<smem>>) -> (i32, i32) {
    %c0_i32 = arith.constant 0 : i32
    %c0_i32_0 = arith.constant 0 : i32
    %c0_i32_1 = arith.constant 0 : i32
    return %c0_i32, %c0_i32_0 : i32, i32
  }
  func.func @transform_4(%arg0: i32, %arg1: memref<1xi32, #tpu.memory_space<smem>>) -> (i32, i32) {
    %c0_i32 = arith.constant 0 : i32
    %c0_i32_0 = arith.constant 0 : i32
    %c0_i32_1 = arith.constant 0 : i32
    return %c0_i32, %c0_i32_0 : i32, i32
  }
  func.func @transform_5(%arg0: i32, %arg1: memref<1xi32, #tpu.memory_space<smem>>) -> (i32, i32) {
    %c0_i32 = arith.constant 0 : i32
    %c0_i32_0 = arith.constant 0 : i32
    %c0_i32_1 = arith.constant 0 : i32
    return %c0_i32, %c0_i32_0 : i32, i32
  }
  func.func @transform_6(%arg0: i32, %arg1: memref<1xi32, #tpu.memory_space<smem>>) -> (i32, i32) {
    %c0_i32 = arith.constant 0 : i32
    %c0_i32_0 = arith.constant 0 : i32
    %c0_i32_1 = arith.constant 0 : i32
    return %c0_i32, %c0_i32_0 : i32, i32
  }
  func.func @transform_7(%arg0: i32, %arg1: memref<1xi32, #tpu.memory_space<smem>>) -> (i32, i32) {
    %c0_i32 = arith.constant 0 : i32
    %c0_i32_0 = arith.constant 0 : i32
    %c0_i32_1 = arith.constant 0 : i32
    return %c0_i32, %c0_i32_0 : i32, i32
  }
  func.func @transform_8(%arg0: i32, %arg1: memref<1xi32, #tpu.memory_space<smem>>) -> (i32, i32) {
    %c0_i32 = arith.constant 0 : i32
    %c0_i32_0 = arith.constant 0 : i32
    %c0_i32_1 = arith.constant 0 : i32
    return %c0_i32, %c0_i32_0 : i32, i32
  }
  func.func @transform_9(%arg0: i32, %arg1: memref<1xi32, #tpu.memory_space<smem>>) -> (i32, i32) {
    %c0_i32 = arith.constant 0 : i32
    %c0_i32_0 = arith.constant 0 : i32
    %c0_i32_1 = arith.constant 0 : i32
    return %c0_i32, %c0_i32_0 : i32, i32
  }
  func.func @transform_10(%arg0: i32, %arg1: memref<1xi32, #tpu.memory_space<smem>>) -> (i32, i32) {
    %c0_i32 = arith.constant 0 : i32
    %c0_i32_0 = arith.constant 0 : i32
    %c0_i32_1 = arith.constant 0 : i32
    return %c0_i32, %c0_i32_0 : i32, i32
  }
  func.func @transform_11(%arg0: i32, %arg1: memref<1xi32, #tpu.memory_space<smem>>) -> (i32, i32) {
    %c0_i32 = arith.constant 0 : i32
    %c0_i32_0 = arith.constant 0 : i32
    %c0_i32_1 = arith.constant 0 : i32
    return %c0_i32, %c0_i32_0 : i32, i32
  }
  func.func @transform_12(%arg0: i32, %arg1: memref<1xi32, #tpu.memory_space<smem>>) -> (i32, i32) {
    %c0_i32 = arith.constant 0 : i32
    %c0_i32_0 = arith.constant 0 : i32
    %c0_i32_1 = arith.constant 0 : i32
    return %c0_i32, %c0_i32_0 : i32, i32
  }
  func.func @transform_13(%arg0: i32, %arg1: memref<1xi32, #tpu.memory_space<smem>>) -> (i32, i32) {
    %c0_i32 = arith.constant 0 : i32
    %c0_i32_0 = arith.constant 0 : i32
    %c0_i32_1 = arith.constant 0 : i32
    return %c0_i32, %c0_i32_0 : i32, i32
  }
  func.func @transform_14(%arg0: i32, %arg1: memref<1xi32, #tpu.memory_space<smem>>) -> (i32, i32) {
    %c0_i32 = arith.constant 0 : i32
    %c0_i32_0 = arith.constant 0 : i32
    return %arg0, %c0_i32 : i32, i32
  }
  func.func @transform_15(%arg0: i32, %arg1: memref<1xi32, #tpu.memory_space<smem>>) -> (i32, i32) {
    %c0_i32 = arith.constant 0 : i32
    %c0_i32_0 = arith.constant 0 : i32
    return %arg0, %c0_i32 : i32, i32
  }
  func.func @transform_16(%arg0: i32, %arg1: memref<1xi32, #tpu.memory_space<smem>>) -> (i32, i32) {
    %c0_i32 = arith.constant 0 : i32
    %c0_i32_0 = arith.constant 0 : i32
    return %arg0, %c0_i32 : i32, i32
  }
}

</mosaic_0001>

<bundles_post_ra>
// kernel: pietext_forward.1
= control target key start
LH: loop header
LB: loop body
LE: loop exit
PB: predicated region body
PF: predicated region fallthrough
CT: control target
= control target key end

     0   :  { %v1341_v37 = vmov 0   ;;  %v415_v39 = vlaneseq  ;;  %vm449_vm0 = vcmask 1041409   ;;  %vm451_vm1 = vcmask 1042434   ;;  %s1707_s9 = inlined_call_operand.vmem [shape: bf16[128,128], index: 9, kind: input, shape index: {}]   ;;  %s1708_s1 = inlined_call_operand.vmem [shape: bf16[8,8,128], index: 1, kind: input, shape index: {}]   ;;  %s1709_s10 = inlined_call_operand.vmem [shape: f32[1,128], index: 10, kind: input, shape index: {}]   ;;  %s1710_s2 = inlined_call_operand.vmem [shape: s32[8,1], index: 2, kind: input, shape index: {}]   ;;  %s1711_s0 = inlined_call_operand.<no memory space> [shape: s32[1], index: 0, kind: input, shape index: {}]   ;;  %s1712_s3 = inlined_call_operand.vmem [shape: bf16[128,96], index: 3, kind: input, shape index: {}]   ;;  %s1713_s11 = inlined_call_operand.vmem [shape: bf16[128,32], index: 11, kind: input, shape index: {}]   ;;  %s1714_s12 = inlined_call_operand.vmem [shape: f32[1,32], index: 12, kind: input, shape index: {}]   ;;  %s1715_s13 = inlined_call_operand.vmem [shape: f32[1,32], index: 13, kind: input, shape index: {}]   ;;  %s1716_s14 = inlined_call_operand.vmem [shape: f32[1,32], index: 14, kind: input, shape index: {}]   ;;  %s1717_s15 = inlined_call_operand.vmem [shape: f32[8,32], index: 15, kind: output, shape index: {0}]   ;;  %s1718_s17 = inlined_call_operand.vmem [shape: f32[8,32], index: 17, kind: output, shape index: {2}]   ;;  %s1719_s16 = inlined_call_operand.vmem [shape: f32[8,8], index: 16, kind: output, shape index: {1}]   ;;  %s1720_s4 = inlined_call_operand.vmem [shape: f32[1,96], index: 4, kind: input, shape index: {}]   ;;  %s1721_s5 = inlined_call_operand.vmem [shape: bf16[16,48], index: 5, kind: input, shape index: {}]   ;;  %s1722_s6 = inlined_call_operand.vmem [shape: f32[1,48], index: 6, kind: input, shape index: {}]   ;;  %s1723_s7 = inlined_call_operand.vmem [shape: bf16[16,48], index: 7, kind: input, shape index: {}]   ;;  %s1724_s8 = inlined_call_operand.vmem [shape: f32[1,48], index: 8, kind: input, shape index: {}]  }
   0x1   :  { %1727 = sst [smem:[#allocation7_spill]] %s1707_s9  ;;  %v1078_v18 = vld [vmem:[%s1709_s10] ss:$0 sm:$0xff]  ;;  %1260 = vset.pattern.permute.xlu0 %v1341_v37  ;;  %vm453_vm2 = vcmask 1043459   ;;  %vm455_vm3 = vcmask 1044484   ;;  %vm457_vm4 = vcmask 1045509  }
   0x2   :  { %1728 = sst [smem:[#allocation8_spill]] %s1708_s1  ;;  %s1729_s26 = sld [smem:[#allocation7_spill]]  ;;  %v1495_v38 = vld [vmem:[%s1710_s2] sm:$0xff]  ;;  %v416_v40 = vand.u32 127, %v415_v39  ;;  %v1498_v41 = vshrl.u32 %v415_v39, 7  ;;  %vm459_vm5 = vcmask 1046534  }
   0x3   :  { %s1730_s20 = sld [smem:[#allocation8_spill]]  ;;  %vm461_vm6 = vcmask 1047559   ;;  %vm501_vm8 = vcmask 64512   ;;  %vm230_vm9 = vcmask 781312   ;;  %vm640_vm10 = vcmask 130048   ;;  %p1079_p0 = scmp.le.s32.totalorder %s1711_s0, 0 }
   0x4   :  { %v419_v44 = vsub.s32 %v416_v40, %v1498_v41 }
   0x8   :  { %v1261_v0 = vld [vmem:[%s1729_s26] sm:$0xff]   ;;  %v1262_v1 = vld [vmem:[%s1729_s26 + $0x8] sm:$0xff]   ;;  %v1263_v2 = vld [vmem:[%s1729_s26 + $0x10] sm:$0xff]  }
   0x9   :  { %1183 = vmatprep.subr.bf16.mxu1 %v1261_v0  ;;  %v1264_v3 = vld [vmem:[%s1729_s26 + $0x18] sm:$0xff]   ;;  %v1269_v4 = vld [vmem:[%s1730_s20] sm:$0xff]   ;;  %v1266_v6 = vld [vmem:[%s1729_s26 + $0x28] sm:$0xff]  }
   0xa   :  { %1184 = vmatpush3.bf16.msra.mxu1 %v1261_v0  ;;  %1199 = vmatprep.mubr.bf16.mxu1 %v1269_v4  ;;  %v1265_v5 = vld [vmem:[%s1729_s26 + $0x20] sm:$0xff]   ;;  %v1267_v7 = vld [vmem:[%s1729_s26 + $0x30] sm:$0xff]   ;;  %v1268_v8 = vld [vmem:[%s1729_s26 + $0x38] sm:$0xff]  }
   0xb   :  { %1185 = vmatprep.subr.bf16.mxu1 %v1262_v1  ;;  %1175 = vmatprep.mubr.bf16.mxu0 %v1269_v4  ;;  %v1474_v9 = vld [vmem:[%s1730_s20 + $0x8] sm:$0xff]   ;;  %v1479_v10 = vld [vmem:[%s1730_s20 + $0x10] sm:$0xff]   ;;  %v1486_v11 = vld [vmem:[%s1730_s20 + $0x18] sm:$0xff]  }
   0xe   :  { %1186 = vmatpush3.bf16.msra.mxu1 %v1262_v1 }
   0xf   :  { %1187 = vmatprep.subr.bf16.mxu1 %v1263_v2 }
  0x12   :  { %1188 = vmatpush3.bf16.msra.mxu1 %v1263_v2 }
  0x13   :  { %1189 = vmatprep.subr.bf16.mxu1 %v1264_v3 }
  0x16   :  { %1190 = vmatpush3.bf16.msra.mxu1 %v1264_v3 }
  0x17   :  { %1191 = vmatprep.subr.bf16.mxu1 %v1265_v5 }
  0x1a   :  { %1192 = vmatpush3.bf16.msra.mxu1 %v1265_v5 }
  0x1b   :  { %1193 = vmatprep.subr.bf16.mxu1 %v1266_v6 }
  0x1e   :  { %1194 = vmatpush3.bf16.msra.mxu1 %v1266_v6 }
  0x1f   :  { %1195 = vmatprep.subr.bf16.mxu1 %v1267_v7 }
  0x22   :  { %1196 = vmatpush3.bf16.msra.mxu1 %v1267_v7 }
  0x23   :  { %1197 = vmatprep.subr.bf16.mxu1 %v1268_v8 }
  0x26   :  { %1198 = vmatpush3.bf16.msra.mxu1 %v1268_v8 }
  0x29   :  { %1200 = vmatmul.mubr.bf16.vlgmr.msra.gmra.mrb[0].mxu1 %v1474_v9 }
  0x2a   :  { %1203 = vmatprep.mubr.bf16.mxu1 %v1479_v10 }
  0x31   :  { %1204 = vmatmul.mubr.bf16.gmra.mrb[4].mxu1 %v1486_v11 }
  0xfc   :  { %v1201_v12 = vpop.f32.mrb[0].mxu1 }
  0xfd   :  { %1281 = vtanh.f32 %v1201_v12  ;;  %v337_v13 = vpop.f32.mrb[1].mxu1 }
  0xfe   :  { %1283 = vtanh.f32 %v337_v13  ;;  %v1202_v14 = vpop.f32.mrb[2].mxu1 }
  0xff   :  { %1285 = vtanh.f32 %v1202_v14  ;;  %v340_v15 = vpop.f32.mrb[3].mxu1  ;;  %v1273_v14 = vld [vmem:[%s1712_s3] sm:$0xff]  }
 0x100   :  { %1287 = vtanh.f32 %v340_v15  ;;  %v1274_v15 = vld [vmem:[%s1712_s3 + $0x8] sm:$0xff]   ;;  %1159 = vmatprep.subr.bf16.mxu0 %v1273_v14 }
 0x101   :  { %1160 = vmatpush3.bf16.msra.mxu0 %v1273_v14 }
 0x102   :  { %1161 = vmatprep.subr.bf16.mxu0 %v1274_v15 }
 0x104   :  { %v1205_v16 = vpop.f32.mrb[4].mxu1 }
 0x105   :  { %v353_v17 = vpop.f32.mrb[5].mxu1  ;;  %1162 = vmatpush3.bf16.msra.mxu0 %v1274_v15  ;;  %v1119_v15 = vld [vmem:[%s1730_s20 + $0x8] sm:$0xff]  }
 0x106   :  { %1289 = vtanh.f32 %v353_v17  ;;  %v1206_v19 = vpop.f32.mrb[6].mxu1  ;;  %v1276_v17 = vld [vmem:[%s1712_s3 + $0x18] sm:$0xff]  }
 0x107   :  { %v1282_v20 = vpop.eup %1281  ;;  %1291 = vtanh.f32 %v1205_v16  ;;  %v356_v21 = vpop.f32.mrb[7].mxu1  ;;  %v1275_v16 = vld [vmem:[%s1712_s3 + $0x10] sm:$0xff]  }
 0x108   :  { %v1284_v22 = vpop.eup %1283  ;;  %1293 = vtanh.f32 %v356_v21  ;;  %v385_v23 = vmul.f32 %v1282_v20, %v1078_v18  ;;  %1163 = vmatprep.subr.bf16.mxu0 %v1275_v16  ;;  %v1279_v20 = vld [vmem:[%s1712_s3 + $0x30] sm:$0xff]   ;;  %v1280_v21 = vld [vmem:[%s1712_s3 + $0x38] sm:$0xff]  }
 0x109   :  { %v1286_v24 = vpop.eup %1285  ;;  %v383_v25 = vmul.f32 %v1284_v22, %v1078_v18  ;;  %1295 = vtanh.f32 %v1206_v19  ;;  %1164 = vmatpush3.bf16.msra.mxu0 %v1275_v16  ;;  %v1278_v19 = vld [vmem:[%s1712_s3 + $0x28] sm:$0xff]  }
 0x10a   :  { %v1288_v26 = vpop.eup %1287  ;;  %395 = vadd.xlane.f32.xlu1 %v385_v23  ;;  %v386_v27 = vmul.f32 %v1286_v24, %v1078_v18  ;;  %1165 = vmatprep.subr.bf16.mxu0 %v1276_v17 }
 0x10b   :  { %391 = vadd.xlane.f32.xlu0 %v383_v25  ;;  %v384_v28 = vmul.f32 %v1288_v26, %v1078_v18  ;;  %v599_v25 = vsub.s32 5, %v1498_v41  ;;  %v564_v26 = vsub.s32 0, %v1498_v41 }
 0x10d   :  { %1166 = vmatpush3.bf16.msra.mxu0 %v1276_v17 }
 0x10e   :  { %397 = vadd.xlane.f32.xlu1 %v386_v27 }
 0x10f   :  { %393 = vadd.xlane.f32.xlu0 %v384_v28 }
 0x110   :  { %v1290_v29 = vpop.eup %1289 }
 0x111   :  { %v1292_v30 = vpop.eup %1291  ;;  %v387_v31 = vmul.f32 %v1290_v29, %v1078_v18 }
 0x112   :  { %v1294_v32 = vpop.eup %1293  ;;  %v389_v35 = vmul.f32 %v1292_v30, %v1078_v18  ;;  %v571_v30 = vsub.s32 1, %v1498_v41 }
 0x113   :  { %399 = vadd.xlane.f32.xlu0 %v387_v31  ;;  %v388_v33 = vmul.f32 %v1294_v32, %v1078_v18  ;;  %v1296_v34 = vpop.eup %1295  ;;  %v1057_v31 = vld [vmem:[%s1720_s4] ss:$0 sm:$0xff] }
 0x114   :  { %v390_v36 = vmul.f32 %v1296_v34, %v1078_v18  ;;  %v1277_v18 = vld [vmem:[%s1712_s3 + $0x20] sm:$0xff]   ;;  %s1614_s3 = smov (!%p1079_p0), 0  }
 0x115   :  { %401 = vadd.xlane.f32.xlu1 %v388_v33  ;;  %1167 = vmatprep.subr.bf16.mxu0 %v1277_v18 }
 0x116   :  { %1168 = vmatpush3.bf16.msra.mxu0 %v1277_v18  ;;  %v1109_v18 = vunpack.c.l.bf16 %v1119_v15 }
 0x117   :  { %403 = vadd.xlane.f32.xlu0 %v389_v35  ;;  %1169 = vmatprep.subr.bf16.mxu0 %v1278_v19 }
 0x119   :  { %405 = vadd.xlane.f32.xlu1 %v390_v36  ;;  %v578_v36 = vsub.s32 2, %v1498_v41 }
 0x11a   :  { %1170 = vmatpush3.bf16.msra.mxu0 %v1278_v19 }
 0x11b   :  { %1171 = vmatprep.subr.bf16.mxu0 %v1279_v20 }
 0x11e   :  { %1172 = vmatpush3.bf16.msra.mxu0 %v1279_v20 }
 0x11f   :  { %1173 = vmatprep.subr.bf16.mxu0 %v1280_v21 }
 0x122   :  { %1174 = vmatpush3.bf16.msra.mxu0 %v1280_v21 }
 0x125   :  { %1176 = vmatmul.mubr.bf16.vlgmr.msra.gmra.mrb[0].mxu0 %v1474_v9 }
 0x126   :  { %1179 = vmatprep.mubr.bf16.mxu0 %v1479_v10 }
 0x12d   :  { %497 = vperm.xlu0 %1260, %v1495_v38   ;;  %1180 = vmatmul.mubr.bf16.gmra.mrb[4].mxu0 %v1486_v11 }
 0x197   :  { %v396_v42 = vpop.xlane.xlu1 %395 }
 0x198   :  { %v392_v43 = vpop.xlane.xlu0 %391  ;;  %v428_v49 = vrot.slane %v396_v42, %v419_v44 }
 0x199   :  { %v420_v47 = vrot.slane %v392_v43, %v419_v44 }
 0x19b   :  { %v398_v45 = vpop.xlane.xlu1 %397 }
 0x19c   :  { %v394_v46 = vpop.xlane.xlu0 %393  ;;  %v432_v50 = vrot.slane %v398_v45, %v419_v44 }
 0x19d   :  { %v424_v48 = vrot.slane %v394_v46, %v419_v44 }
 0x19f   :  { %v450_v51 = vsel %vm449_vm0, %v424_v48, %v420_v47 }
 0x1a0   :  { %v452_v52 = vsel %vm451_vm1, %v428_v49, %v450_v51  ;;  %v400_v53 = vpop.xlane.xlu0 %399  ;;  %v585_v51 = vsub.s32 3, %v1498_v41 }
 0x1a1   :  { %v454_v54 = vsel %vm453_vm2, %v432_v50, %v452_v52  ;;  %v436_v55 = vrot.slane %v400_v53, %v419_v44 }
 0x1a2   :  { %v402_v56 = vpop.xlane.xlu1 %401 }
 0x1a3   :  { %v456_v57 = vsel %vm455_vm3, %v436_v55, %v454_v54  ;;  %v440_v58 = vrot.slane %v402_v56, %v419_v44 }
 0x1a4   :  { %v404_v59 = vpop.xlane.xlu0 %403 }
 0x1a5   :  { %v444_v60 = vrot.slane %v404_v59, %v419_v44  ;;  %v458_v61 = vsel %vm457_vm4, %v440_v58, %v456_v57 }
 0x1a6   :  { %v406_v62 = vpop.xlane.xlu1 %405 }
 0x1a7   :  { %v448_v63 = vrot.slane %v406_v62, %v419_v44  ;;  %v460_v0 = vsel %vm459_vm5, %v444_v60, %v458_v61  ;;  %v592_v60 = vsub.s32 4, %v1498_v41  ;;  %v606_v61 = vsub.s32 6, %v1498_v41  ;;  %v1562_v62 = vld [vmem:[%s1721_s5] sm:$0xf] }
 0x1a9   :  { %v462_v1 = vsel %vm461_vm6, %v448_v63, %v460_v0  ;;  %v1567_v63 = vld [vmem:[%s1721_s5 + $0x4] sm:$0xf] }
 0x1aa   :  { %464 = vxpose.xlu1.b32.start.end [1/1] (short) (narrow) %v462_v1, 8  ;;  %v1573_v1 = vld [vmem:[%s1722_s6] ss:$0 sm:$0xff] }
 0x1ac   :  { %v498_v2 = vpop.permute.xlu0 %497 }
 0x1ad   :  { %vm499_vm7 = vcmp.ge.s32.totalorder %v416_v40, %v498_v2  ;;  %v1578_v2 = vld [vmem:[%s1723_s7] sm:$0xf] }
 0x1f8   :  { %v1177_v27 = vpop.f32.mrb[0].mxu0 }
 0x1f9   :  { %v191_v9 = vpop.f32.mrb[1].mxu0  ;;  %v200_v33 = vadd.f32 %v1177_v27, %v1057_v31 }
 0x1fa   :  { %v1178_v10 = vpop.f32.mrb[2].mxu0  ;;  %v192_v34 = vadd.f32 %v1057_v31, %v191_v9  ;;  %v1121_v9 = vld [vmem:[%s1730_s20 + $0x18] sm:$0xff]  }
 0x1fb   :  { %v194_v32 = vpop.f32.mrb[3].mxu0  ;;  %v203_v35 = vadd.f32 %v1178_v10, %v1057_v31  ;;  %v224_v40 = vpack.c.bf16 %v200_v33, %v200_v33 }
 0x1fc   :  { %v195_v37 = vadd.f32 %v1057_v31, %v194_v32  ;;  %v222_v42 = vpack.c.bf16 %v192_v34, %v192_v34  ;;  %v1117_v32 = vunpack.c.l.bf16 %v1121_v9 }
 0x1fd   :  { %v225_v43 = vpack.c.bf16 %v203_v35, %v203_v35  ;;  %233 = vst.msk [vmem:[#allocation2 + $0x8] sm:$0xf] %vm230_vm9, %v224_v40 }
 0x1fe   :  { %v223_v44 = vpack.c.bf16 %v195_v37, %v195_v37  ;;  %231 = vst.msk [vmem:[#allocation2] sm:$0xf] %vm230_vm9, %v222_v42 }
 0x1ff   :  { %234 = vst.msk [vmem:[#allocation2 + $0xc] sm:$0xf] %vm230_vm9, %v225_v43 }
 0x200   :  { %v1181_v45 = vpop.f32.mrb[4].mxu0  ;;  %232 = vst.msk [vmem:[#allocation2 + $0x4] sm:$0xf] %vm230_vm9, %v223_v44 }
 0x201   :  { %v207_v46 = vpop.f32.mrb[5].mxu0  ;;  %v216_v47 = vadd.f32 %v1181_v45, %v1057_v31 }
 0x202   :  { %v208_v48 = vadd.f32 %v1057_v31, %v207_v46  ;;  %v1182_v49 = vpop.f32.mrb[6].mxu0 }
 0x203   :  { %v219_v52 = vadd.f32 %v1182_v49, %v1057_v31  ;;  %v210_v53 = vpop.f32.mrb[7].mxu0  ;;  %v228_v54 = vpack.c.bf16 %v216_v47, %v216_v47 }
 0x204   :  { %v226_v55 = vpack.c.bf16 %v208_v48, %v208_v48  ;;  %v211_v56 = vadd.f32 %v1057_v31, %v210_v53 }
 0x205   :  { %v229_v57 = vpack.c.bf16 %v219_v52, %v219_v52  ;;  %237 = vst.msk [vmem:[#allocation2 + $0x18] sm:$0xf] %vm230_vm9, %v228_v54 }
 0x206   :  { %235 = vst.msk [vmem:[#allocation2 + $0x10] sm:$0xf] %vm230_vm9, %v226_v55  ;;  %v227_v58 = vpack.c.bf16 %v211_v56, %v211_v56 }
 0x207   :  { %238 = vst.msk [vmem:[#allocation2 + $0x1c] sm:$0xf] %vm230_vm9, %v229_v57 }
 0x208   :  { %236 = vst.msk [vmem:[#allocation2 + $0x14] sm:$0xf] %vm230_vm9, %v227_v58 }
 0x22a   :  { %v480_v3 = vpop.trf.xlu1 }
 0x22b   :  { %v500_v4 = vsel %vm499_vm7, -1e+30, %v480_v3  ;;  %v1583_v3 = vld [vmem:[%s1723_s7 + $0x4] sm:$0xf] }
 0x22c   :  { %v502_v5 = vsel %vm501_vm8, %v500_v4, -inf }
 0x22d   :  { %503 = vmax.xlane.f32.xlu0 %v502_v5  ;;  %v1592_v5 = vld [vmem:[%s1724_s8] ss:$0 sm:$0xff] }
 0x2ba   :  { %v504_v6 = vpop.xlane.xlu0 %503 }
 0x2bb   :  { %v505_v7 = vsub.f32 %v500_v4, %v504_v6  ;;  %v1342_v4 = vmov 0.0  }
 0x2bc   :  { %641 = vst.msk [vmem:[#allocation3] sm:$0xff] %vm640_vm10, %v1342_v4  ;;  %642 = vst.msk [vmem:[#allocation4] sm:$0xff] %vm640_vm10, %v1342_v4 }
 0x2bd   :  { %v506_v8 = vmul.f32 1.442695, %v505_v7  ;;  %v613_v7 = vsub.s32 7, %v1498_v41  ;;  %v1110_v41 = vunpack.c.h.bf16 %v1119_v15 }
 0x2bf   :  { %1297 = vpow2.f32 %v506_v8 }
 0x2c9   :  { %v1298_v12 = vpop.eup %1297 }
 0x2ca   :  { %v508_v13 = vsel %vm501_vm8, %v1298_v12, 0.0 }
 0x2cb   :  { %509 = vadd.xlane.f32.xlu1 %v508_v13  ;;  %v1104_v13 = vld [vmem:[%s1730_s20] sm:$0xff]  }
 0x2cc   :  { %v1106_v16 = vunpack.c.h.bf16 %v1104_v13  ;;  %v1105_v17 = vunpack.c.l.bf16 %v1104_v13 }
 0x358   :  { %v510_v22 = vpop.xlane.xlu1 %509 }
 0x359   :  { %1299 = vrcp.f32 %v510_v22 }
 0x363   :  { %v1300_v23 = vpop.eup %1299 }
 0x364   :  { %v512_v24 = vmul.f32 %v1300_v23, %v1298_v12  ;;  %v1120_v23 = vld [vmem:[%s1730_s20 + $0x10] sm:$0xff]  }
 0x365   :  { %v1113_v27 = vunpack.c.l.bf16 %v1120_v23 }
 0x366   :  { %514 = vxpose.xlu0.b32.start.end [1/1] (short) (narrow) %v512_v24, 8  ;;  %513 = vst.msk [vmem:[%s1719_s16] sm:$0xff] %vm501_vm8, %v512_v24 }
 0x3e6   :  { %v1536_v28 = vpop.trf.xlu0 }
 0x3e7   :  { %v600_v11 = vrot.slane %v1536_v28, %v599_v25  ;;  %v565_v29 = vrot.slane %v1536_v28, %v564_v26  ;;  %v572_v39 = vrot.slane %v1536_v28, %v571_v30  ;;  %v579_v50 = vrot.slane %v1536_v28, %v578_v36 }
 0x3e8   :  { %v586_v59 = vrot.slane %v1536_v28, %v585_v51  ;;  %v593_v0 = vrot.slane %v1536_v28, %v592_v60  ;;  %v607_v6 = vrot.slane %v1536_v28, %v606_v61  ;;  %v614_v8 = vrot.slane %v1536_v28, %v613_v7 }
 0x3e9   :  { %602 = vbcast.lane.b32.xlu0 %v600_v11, 256  ;;  %567 = vbcast.lane.b32.xlu1 %v565_v29, 256  ;;  %v1114_v28 = vunpack.c.h.bf16 %v1120_v23 }
 0x3ed   :  { %574 = vbcast.lane.b32.xlu1 %v572_v39, 256  ;;  %v1118_v39 = vunpack.c.h.bf16 %v1121_v9 }
 0x3f1   :  { %581 = vbcast.lane.b32.xlu1 %v579_v50, 256 }
 0x3f5   :  { %588 = vbcast.lane.b32.xlu1 %v586_v59, 256 }
 0x3f9   :  { %595 = vbcast.lane.b32.xlu1 %v593_v0, 256 }
 0x3fd   :  { %609 = vbcast.lane.b32.xlu1 %v607_v6, 256 }
 0x401   :  { %616 = vbcast.lane.b32.xlu1 %v614_v8, 256 }
 0x45b   :  { %v568_v12 = vpop.permute.xlu1 %567  ;;  %v603_v11 = vpop.permute.xlu0 %602 }
 0x45c   :  { %v618_v21 = vmul.f32 %v1105_v17, %v568_v12  ;;  %v623_v33 = vmul.f32 %v1114_v28, %v603_v11 }
 0x45f   :  { %v575_v14 = vpop.permute.xlu1 %574 }
 0x460   :  { %v619_v20 = vmul.f32 %v1106_v16, %v575_v14 }
 0x462   :  { %v626_v25 = vadd.f32 %v619_v20, %v618_v21 }
 0x463   :  { %v582_v19 = vpop.permute.xlu1 %581 }
 0x464   :  { %v620_v22 = vmul.f32 %v1109_v18, %v582_v19 }
 0x466   :  { %v627_v10 = vadd.f32 %v626_v25, %v620_v22 }
 0x467   :  { %v589_v24 = vpop.permute.xlu1 %588 }
 0x468   :  { %v621_v26 = vmul.f32 %v1110_v41, %v589_v24 }
 0x46a   :  { %v628_v30 = vadd.f32 %v627_v10, %v621_v26 }
 0x46b   :  { %v596_v29 = vpop.permute.xlu1 %595 }
 0x46c   :  { %v622_v31 = vmul.f32 %v1113_v27, %v596_v29 }
 0x46e   :  { %v629_v34 = vadd.f32 %v628_v30, %v622_v31 }
 0x46f   :  { %v610_v35 = vpop.permute.xlu1 %609 }
 0x470   :  { %v630_v36 = vadd.f32 %v629_v34, %v623_v33  ;;  %v624_v37 = vmul.f32 %v1117_v32, %v610_v35  ;;  %1054 = sbr.rel (%p1079_p0) target bundleno = 1871 (0x74f), region = 95 }
 0x472   :  { %v631_v42 = vadd.f32 %v630_v36, %v624_v37 }
 0x473   :  { %v617_v40 = vpop.permute.xlu1 %616 }
 0x474   :  { %v625_v43 = vmul.f32 %v1118_v39, %v617_v40 }
 0x476   :  { %v1609_v44 = vadd.f32 %v631_v42, %v625_v43 }
 0x477 LB: > { %v1088_v45 = vcombine.low %v1578_v2, %v1583_v3  ;;  %v1621_v46 = vld [vmem:[#allocation4] sm:$0xff]  ;;  %v1084_v47 = vcombine.low %v1562_v62, %v1567_v63  ;;  %v660_v48 = vld [vmem:[#allocation3] sm:$0xff]  ;;  %v1343_v49 = vmov 0.0   ;;  %vm1344_vm11 = vmmov 0   ;;  %s1346_s25 = smov 16   ;;  %s1347_s4 = smov 48   ;;  %s1339_s3 = sphi %s1614_s3, %s647_s3  }
 0x478   : > { %1213 = vmatprep.subr.bf16.mxu1 %v1343_v49  ;;  %1215 = vmatprep.mubr.msk.bf16.mxu1 %vm1344_vm11, %v1343_v49  ;;  %v763_v50 = vpack.c.bf16 %v1621_v46, %v1621_v46  ;;  %v664_v51 = vpack.c.bf16 %v660_v48, %v660_v48  ;;  %v1345_v52 = vmov 0   ;;  %s1348_s16 = smov 96   ;;  %s1081_s27 = sshll.u32 %s1339_s3, 2  ;;  %v662_v19 = vstv %s1339_s3 }
 0x479   : > { %1214 = vmatpush3.bf16.msra.mxu1 %v1088_v45  ;;  %1207 = vmatprep.subr.bf16.mxu0 %v1343_v49  ;;  %s653_s28 = scalar_lea.vmem [#allocation2], %s1081_s27  ;;  %s1080_s30 = sadd.s32 4294967295, %s1711_s0  ;;  %vm663_vm12 = vcmp.lt.s32.totalorder %v662_v19, %v1495_v38 }
 0x47a   : > { %1208 = vmatpush3.bf16.msra.mxu0 %v1084_v47  ;;  %1209 = vmatprep.mubr.msk.bf16.mxu0 %vm1344_vm11, %v1343_v49  ;;  %v654_v6 = vld [vmem:[%s653_s28] sm:$0xf]  ;;  %s651_s18 = ssub.s32 %s1080_s30, %s1339_s3  ;;  %s1349_s5 = smov 32   ;;  %v750_v23 = vsel %vm663_vm12, 1, %v1345_v52 }
 0x47b   : > { %1301 = vset.pattern.permute.xlu1 %v1345_v52  ;;  %1302 = vset.pattern.permute.xlu0 %v1345_v52  ;;  %v655_v7 = vunpack.c.l.bf16 %v654_v6  ;;  %s1082_s19 = sshll.u32 %s651_s18, 2  ;;  %v761_v26 = vstv %s651_s18  ;;  %s1350_s6 = smov 112  }
 0x47c   : > { %1216 = vmatmul.mubr.msk.bf16.vlgmr.msra.gmra.mrb[0].mxu1 %vm640_vm10, %v763_v50  ;;  %s657_s1 = scalar_lea.vmem [#allocation2], %s1082_s19  ;;  %vm762_vm13 = vcmp.lt.s32.totalorder %v761_v26, %v1495_v38  ;;  %s1351_s7 = smov 64  }
 0x47d   : > { %1210 = vmatmul.mubr.msk.bf16.vlgmr.msra.gmra.mrb[0].mxu0 %vm640_vm10, %v664_v51  ;;  %v658_v15 = vld [vmem:[%s657_s1] sm:$0xf]  ;;  %v852_v10 = vsel %vm762_vm13, 1, %v1345_v52  ;;  %s647_s3 = sadd.s32 1, %s1339_s3  }
 0x47e   : > { %v659_v16 = vunpack.c.l.bf16 %v658_v15  ;;  %p646_p1 = scmp.ge.s32.totalorder %s647_s3, %s1711_s0 }
 0x54f   : > { %v813_v53 = vpop.f32.mrb[0].mxu1 }
 0x550   : > { %v814_v54 = vadd.f32 %v1592_v5, %v813_v53  ;;  %v1217_v55 = vpop.f32.mrb[1].mxu1  ;;  %v714_v56 = vpop.f32.mrb[0].mxu0 }
 0x551   : > { %v816_v57 = vpop.f32.mrb[2].mxu1  ;;  %v1211_v58 = vpop.f32.mrb[1].mxu0  ;;  %v715_v60 = vadd.f32 %v1573_v1, %v714_v56 }
 0x552   : > { %830 = vrot.lane.b32.xlu1 %v814_v54, %s1346_s25  ;;  %820 = vrot.lane.b32.xlu0 %v814_v54, %s1347_s4  ;;  %v1218_v59 = vpop.f32.mrb[3].mxu1  ;;  %v717_v61 = vpop.f32.mrb[2].mxu0 }
 0x553   : > { %v1212_v0 = vpop.f32.mrb[3].mxu0  ;;  %v720_v8 = vadd.f32 %v715_v60, %v655_v7 }
 0x555   : > { %v1086_v12 = vmul.f32 -1.442695, %v720_v8 }
 0x556   : > { %728 = vrot.lane.b32.xlu0 %v715_v60, %s1348_s16 }
 0x557   : > { %1303 = vpow2.f32 %v1086_v12 }
 0x561   : > { %v1304_v13 = vpop.eup %1303 }
 0x562   : > { %v724_v14 = vadd.f32 1.0, %v1304_v13 }
 0x564   : > { %1305 = vrcp.f32 %v724_v14 }
 0x56e   : > { %v1306_v41 = vpop.eup %1305 }
 0x56f   : > { %v738_v36 = vsub.f32 1.0, %v1306_v41 }
 0x5c4   : > { %v821_v17 = vpop.permute.xlu0 %820  ;;  %v831_v9 = vpop.permute.xlu1 %830 }
 0x5c5   : > { %v823_v18 = vadd.f32 %v821_v17, %v659_v16 }
 0x5c7   : > { %v1090_v20 = vmul.f32 -1.442695, %v823_v18 }
 0x5c8   : > { %v729_v21 = vpop.permute.xlu0 %728 }
 0x5c9   : > { %1307 = vpow2.f32 %v1090_v20  ;;  %v731_v22 = vmul.f32 %v1306_v41, %v729_v21 }
 0x5cb   : > { %733 = vrot.lane.b32.xlu1 %v731_v22, %s1349_s5 }
 0x5cf   : > { %752 = vperm.xlu1 %1301, %v750_v23  }
 0x5d3   : > { %v1308_v24 = vpop.eup %1307  ;;  %745 = vrot.lane.b32.xlu1 %v660_v48, %s1346_s25 }
 0x5d4   : > { %v827_v25 = vadd.f32 1.0, %v1308_v24 }
 0x5d6   : > { %1309 = vrcp.f32 %v827_v25 }
 0x5e0   : > { %v1310_v27 = vpop.eup %1309 }
 0x5e1   : > { %v833_v28 = vmul.f32 %v1310_v27, %v831_v9  ;;  %v840_v48 = vsub.f32 1.0, %v1310_v27 }
 0x5e3   : > { %835 = vrot.lane.b32.xlu0 %v833_v28, %s1349_s5 }
 0x5e7   : > { %854 = vperm.xlu0 %1302, %v852_v10  }
 0x63d   : > { %v734_v11 = vpop.permute.xlu1 %733 }
 0x63e   : > { %v736_v29 = vadd.f32 %v734_v11, %v655_v7 }
 0x640   : > { %1311 = vtanh.f32 %v736_v29 }
 0x64a   : > { %v1312_v30 = vpop.eup %1311 }
 0x64b   : > { %740 = vrot.lane.b32.xlu1 %v1312_v30, %s1350_s6 }
 0x64e   : > { %v753_v34 = vpop.permute.xlu1 %752 }
 0x64f   : > { %847 = vrot.lane.b32.xlu1 %v1621_v46, %s1351_s7  ;;  %vm754_vm14 = vcmp.eq.s32.totalorder %v753_v34, 1 }
 0x652   : > { %v746_v35 = vpop.permute.xlu1 %745 }
 0x653   : > { %v748_v39 = vmul.f32 %v1306_v41, %v746_v35 }
 0x655   : > { %v836_v31 = vpop.permute.xlu0 %835 }
 0x656   : > { %v838_v32 = vadd.f32 %v836_v31, %v659_v16 }
 0x658   : > { %1313 = vtanh.f32 %v838_v32 }
 0x662   : > { %v1314_v33 = vpop.eup %1313 }
 0x663   : > { %842 = vrot.lane.b32.xlu0 %v1314_v33, %s1350_s6 }
 0x666   : > { %v855_v45 = vpop.permute.xlu0 %854 }
 0x667   : > { %vm856_vm15 = vcmp.eq.s32.totalorder %v855_v45, 1 }
 0x6bd   : > { %v741_v37 = vpop.permute.xlu1 %740 }
 0x6be   : > { %v743_v40 = vmul.f32 %v741_v37, %v738_v36 }
 0x6c0   : > { %v749_v42 = vadd.f32 %v748_v39, %v743_v40 }
 0x6c1   : > { %v848_v47 = vpop.permute.xlu1 %847 }
 0x6c2   : > { %v755_v43 = vsel %vm754_vm14, %v749_v42, %v746_v35  ;;  %v850_v46 = vmul.f32 %v1310_v27, %v848_v47 }
 0x6c3   : > { %757 = vrot.lane.b32.xlu0 %v755_v43, %s1350_s6 }
 0x6d5   : > { %v843_v49 = vpop.permute.xlu0 %842 }
 0x6d6   : > { %v845_v50 = vmul.f32 %v843_v49, %v840_v48 }
 0x6d8   : > { %v851_v51 = vadd.f32 %v850_v46, %v845_v50 }
 0x6da   : > { %v857_v52 = vsel %vm856_vm15, %v851_v51, %v848_v47 }
 0x6db   : > { %859 = vrot.lane.b32.xlu1 %v857_v52, %s1351_s7 }
 0x735   : > { %v758_v53 = vpop.permute.xlu0 %757 }
 0x736   : > { %760 = vst.msk [vmem:[#allocation3] sm:$0xff] %vm640_vm10, %v758_v53 }
 0x748   :  { %649 = sbr.rel (!%p646_p1) target bundleno = 1143 (0x477), region = 101 }
 0x74d   : > { %v860_v54 = vpop.permute.xlu1 %859 }
 0x74e   : > { %862 = vst.msk [vmem:[#allocation4] sm:$0xff] %vm640_vm10, %v860_v54 }
 0x74f PF:  { %1219 = vmatprep.subr.bf16.mxu0 %v1342_v4  ;;  %v1315_v55 = vld [vmem:[%s1713_s11] sm:$0xff]   ;;  %vm1352_vm0 = vmmov 0   ;;  %v1316_v56 = vld [vmem:[%s1713_s11 + $0x8] sm:$0xff]   ;;  %v1317_v38 = vld [vmem:[%s1713_s11 + $0x10] sm:$0xff]   ;;  %s1353_s0 = smov 16   ;;  %v870_v57 = vpack.c.bf16 %v1609_v44, %v1609_v44  ;;  %vm989_vm1 = vcmask 261120  }
 0x750   :  { %1235 = vmatprep.mubr.msk.bf16.mxu0 %vm1352_vm0, %v1342_v4  ;;  %1220 = vmatpush3.bf16.msra.mxu0 %v1315_v55  ;;  %v1318_v63 = vld [vmem:[%s1713_s11 + $0x18] sm:$0xff]   ;;  %v1319_v1 = vld [vmem:[%s1713_s11 + $0x20] sm:$0xff]   ;;  %v1320_v2 = vld [vmem:[%s1713_s11 + $0x28] sm:$0xff]  }
 0x751   :  { %1221 = vmatprep.subr.bf16.mxu0 %v1342_v4  ;;  %v1321_v3 = vld [vmem:[%s1713_s11 + $0x30] sm:$0xff]   ;;  %v1322_v5 = vld [vmem:[%s1713_s11 + $0x38] sm:$0xff]   ;;  %v1091_v58 = vld [vmem:[%s1714_s12] ss:$0 sm:$0xff] }
 0x752   :  { %v863_v13 = vld [vmem:[#allocation3] sm:$0xff] }
 0x753   :  { %v1101_v25 = vld [vmem:[%s1715_s13] ss:$0 sm:$0xff] }
 0x754   :  { %1222 = vmatpush3.bf16.msra.mxu0 %v1316_v56  ;;  %v1102_v27 = vld [vmem:[%s1716_s14] ss:$0 sm:$0xff] }
 0x755   :  { %1223 = vmatprep.subr.bf16.mxu0 %v1342_v4  ;;  %v864_v62 = vld [vmem:[#allocation4] sm:$0xff] }
 0x756   :  { %866 = vrot.lane.b32.xlu0 %v864_v62, %s1353_s0 }
 0x758   :  { %1224 = vmatpush3.bf16.msra.mxu0 %v1317_v38 }
 0x759   :  { %1225 = vmatprep.subr.bf16.mxu0 %v1342_v4 }
 0x75c   :  { %1226 = vmatpush3.bf16.msra.mxu0 %v1318_v63 }
 0x75d   :  { %1227 = vmatprep.subr.bf16.mxu0 %v1342_v4 }
 0x760   :  { %1228 = vmatpush3.bf16.msra.mxu0 %v1319_v1 }
 0x761   :  { %1229 = vmatprep.subr.bf16.mxu0 %v1342_v4 }
 0x764   :  { %1230 = vmatpush3.bf16.msra.mxu0 %v1320_v2 }
 0x765   :  { %1231 = vmatprep.subr.bf16.mxu0 %v1342_v4 }
 0x768   :  { %1232 = vmatpush3.bf16.msra.mxu0 %v1321_v3 }
 0x769   :  { %1233 = vmatprep.subr.bf16.mxu0 %v1342_v4 }
 0x76c   :  { %1234 = vmatpush3.bf16.msra.mxu0 %v1322_v5 }
 0x76f   :  { %1236 = vmatmul.mubr.bf16.vlgmr.msra.gmra.mrb[0].mxu0 %v870_v57 }
 0x7c8   :  { %v867_v4 = vpop.permute.xlu0 %866 }
 0x7c9   :  { %v869_v44 = vsel %vm640_vm10, %v863_v13, %v867_v4 }
 0x842   :  { %v976_v59 = vpop.f32.mrb[0].mxu0 }
 0x843   :  { %v977_v60 = vadd.f32 %v1091_v58, %v976_v59  ;;  %v1237_v61 = vpop.f32.mrb[1].mxu0 }
 0x844   :  { %v979_v0 = vpop.f32.mrb[2].mxu0 }
 0x845   :  { %v1100_v6 = vmul.f32 -1.442695, %v977_v60  ;;  %v1238_v7 = vpop.f32.mrb[3].mxu0 }
 0x847   :  { %1323 = vpow2.f32 %v1100_v6 }
 0x851   :  { %v1324_v8 = vpop.eup %1323 }
 0x852   :  { %v985_v12 = vadd.f32 1.0, %v1324_v8 }
 0x854   :  { %1325 = vrcp.f32 %v985_v12 }
 0x85e   :  { %v1326_v14 = vpop.eup %1325 }
 0x85f   :  { %v988_v15 = vadd.f32 %v1326_v14, %v869_v44  ;;  %v1028_v29 = vmul.f32 %v1326_v14, %v1326_v14 }
 0x861   :  { %v990_v16 = vsel %vm989_vm1, %v988_v15, 0.0  ;;  %v1029_v30 = vsel %vm989_vm1, %v1028_v29, 0.0 }
 0x862   :  { %991 = vadd.xlane.f32.xlu0 %v990_v16 }
 0x8ef   :  { %v992_v17 = vpop.xlane.xlu0 %991 }
 0x8f0   :  { %v994_v18 = vmul.f32 0.03125, %v992_v17 }
 0x8f2   :  { %v995_v19 = vsub.f32 %v988_v15, %v994_v18 }
 0x8f4   :  { %v996_v20 = vmul.f32 %v995_v19, %v995_v19 }
 0x8f6   :  { %v997_v41 = vsel %vm989_vm1, %v996_v20, 0.0 }
 0x8f7   :  { %998 = vadd.xlane.f32.xlu1 %v997_v41 }
 0x984   :  { %v999_v21 = vpop.xlane.xlu1 %998 }
 0x985   :  { %v1000_v22 = vmul.f32 0.03125, %v999_v21 }
 0x987   :  { %v1001_v23 = vadd.f32 1e-05, %v1000_v22 }
 0x989   :  { %1327 = vrsqrt.f32 %v1001_v23 }
 0x993   :  { %v1328_v24 = vpop.eup %1327 }
 0x994   :  { %v1003_v26 = vmul.f32 %v1328_v24, %v995_v19 }
 0x996   :  { %v1011_v9 = vmul.f32 %v1101_v25, %v1003_v26 }
 0x998   :  { %v1019_v28 = vadd.f32 %v1102_v27, %v1011_v9 }
 0x99a   :  { %v1020_v10 = vmul.f32 %v1019_v28, %v1019_v28 }
 0x99c   :  { %v1021_v11 = vsel %vm989_vm1, %v1020_v10, 0.0 }
 0x99d   :  { %1022 = vadd.xlane.f32.xlu1 %v1021_v11 }
 0x9a1   :  { %1030 = vadd.xlane.f32.xlu1 %v1029_v30 }
 0xa2a   :  { %v1023_v31 = vpop.xlane.xlu1 %1022 }
 0xa2b   :  { %v1024_v32 = vmax.f32 %v1023_v31, 1e-24 }
 0xa2d   :  { %1329 = vrsqrt.f32 %v1024_v32 }
 0xa2e   :  { %v1031_v33 = vpop.xlane.xlu1 %1030 }
 0xa2f   :  { %v1032_v34 = vmax.f32 %v1031_v33, 1e-24 }
 0xa31   :  { %1331 = vrsqrt.f32 %v1032_v34 }
 0xa37   :  { %v1330_v35 = vpop.eup %1329 }
 0xa38   :  { %v1026_v36 = vmul.f32 %v1330_v35, %v1019_v28 }
 0xa3a   :  { %1027 = vst.msk [vmem:[%s1717_s15] sm:$0xff] %vm989_vm1, %v1026_v36 }
 0xa3b   :  { %v1332_v37 = vpop.eup %1331 }
 0xa3c   :  { %v1034_v39 = vmul.f32 %v1332_v37, %v1326_v14 }
 0xa3e   :  { %1035 = vst.msk [vmem:[%s1718_s17] sm:$0xff] %vm989_vm1, %v1034_v39 }

</bundles_post_ra>
